<compile_context>
chip_gen: v7x
topology: tpu7x:2x2x1
jax: 0.10.0
libtpu: 0.0.40
codegen_flags: <defaults>
</compile_context>

<pallas_src>
import jax
import jax.numpy as jnp
from jax import lax
from jax.experimental import pallas as pl
from jax.experimental.pallas import tpu as pltpu


def _lam_kernel(gamma_ref, x_ref, o_ref):
    # gamma_ref: SMEM (1,)  float32
    # x_ref    : VMEM (N, D) block (native dtype) for the current batch element
    # o_ref    : VMEM (N, D) block for the current batch element
    x = x_ref[...]                                            # (N, D), native dtype

    # energy = X @ X^T (contract over D) -> (N, N), f32 accumulation on the MXU.
    energy = lax.dot_general(
        x, x,
        dimension_numbers=(((1,), (1,)), ((), ())),
        preferred_element_type=jnp.float32,
    )

    # softmax(rowmax(E) - E) == exp(rowmin(E) - E) / rowsum(exp(rowmin(E) - E))
    # (identical numerics to torch's stable softmax of energy_new).
    e_min = jnp.min(energy, axis=-1, keepdims=True)           # (N, 1)
    p = jnp.exp(e_min - energy)                               # (N, N), f32
    attn = p * pl.reciprocal(jnp.sum(p, axis=-1, keepdims=True), approx=False)

    # out = attention @ X  -> (N, D); cast attn to x dtype so bf16 inputs keep
    # a pure-bf16 MXU path (f32 accumulate either way).
    out = jnp.dot(attn.astype(x.dtype), x, preferred_element_type=jnp.float32)

    gamma = gamma_ref[0]
    o_ref[...] = (gamma * out + x.astype(jnp.float32)).astype(o_ref.dtype)


def lam_module_forward(x, gamma):
    """x: (B, N, C, H, W), gamma: scalar.  Returns (B, N*C, H, W)."""
    B, N, C, H, W = x.shape
    D = C * H * W
    x_flat = x.reshape(B, N, D)

    # Keep the output lane-dense: pad D to a multiple of 128 if needed.
    # Zero-padding does not change energy, attention, or the unpadded output.
    D_pad = ((D + 127) // 128) * 128
    if D_pad != D:
        x_flat = jnp.pad(x_flat, ((0, 0), (0, 0), (0, D_pad - D)))

    gamma_arr = jnp.asarray(gamma, dtype=jnp.float32).reshape(1)

    itemsize = jnp.dtype(x.dtype).itemsize
    block_bytes = N * D_pad * itemsize
    # 2x double-buffered input block + 2x double-buffered output block
    # + f32 intermediates (out / upcasts) + headroom; capped to fit v7x's
    # 64 MiB VMEM per TensorCore.
    vmem_limit = int(min(
        64 * 2 ** 20,
        max(32 * 2 ** 20, 4 * block_bytes + 4 * N * D_pad * 4 + (2 << 20)),
    ))

    cost = pl.CostEstimate(
        flops=4 * B * N * N * D_pad,          # two (N,N,D) matmuls per batch
        transcendentals=B * N * N,            # exp
        bytes_accessed=2 * B * N * D_pad * itemsize,  # read x once, write once
    )

    out_flat = pl.pallas_call(
        _lam_kernel,
        out_shape=jax.ShapeDtypeStruct((B, N, D_pad), x.dtype),
        grid_spec=pltpu.PrefetchScalarGridSpec(
            num_scalar_prefetch=0,
            grid=(B,),
            in_specs=[
                pl.BlockSpec(memory_space=pltpu.MemorySpace.SMEM),      # gamma
                pl.BlockSpec((None, N, D_pad), lambda b: (b, 0, 0)),    # x
            ],
            out_specs=pl.BlockSpec((None, N, D_pad), lambda b: (b, 0, 0)),
        ),
        compiler_params=pltpu.CompilerParams(
            dimension_semantics=("parallel",),
            vmem_limit_bytes=vmem_limit,
        ),
        cost_estimate=cost,
    )(gamma_arr, x_flat)

    if D_pad != D:
        out_flat = out_flat[:, :, :D]
    return out_flat.reshape(B, N * C, H, W)


def _reference_forward(x, gamma):
    """Pure-JAX reference mirroring the PyTorch module."""
    B, N, C, H, W = x.shape
    q = x.reshape(B, N, -1).astype(jnp.float32)
    energy = jnp.einsum("bnd,bmd->bnm", q, q)
    energy_new = jnp.max(energy, axis=-1, keepdims=True) - energy
    attention = jax.nn.softmax(energy_new, axis=-1)
    out = jnp.einsum("bnm,bmd->bnd", attention, q)
    out = out.reshape(B, N, C, H, W)
    out = gamma * out + x.astype(jnp.float32)
    return out.reshape(B, N * C, H, W).astype(x.dtype)


if __name__ == "__main__":
    key = jax.random.PRNGKey(0)

    # Case 1: D = C*H*W = 1024 (already lane-dense), f32, gamma 0 and 0.5.
    B, N, C, H, W = 2, 8, 4, 16, 16
    x = jax.random.normal(key, (B, N, C, H, W), dtype=jnp.float32)
    for gamma_val in (0.0, 0.5):
        gamma = jnp.float32(gamma_val)
        out = jax.block_until_ready(lam_module_forward(x, gamma))
        ref = _reference_forward(x, gamma)
        assert out.shape == (B, N * C, H, W), out.shape
        assert jnp.allclose(out, ref, atol=1e-4, rtol=1e-4), (
            f"f32 mismatch at gamma={gamma_val}: "
            f"max abs err {jnp.max(jnp.abs(out - ref))}"
        )

    # Case 2: D = 300 (not a multiple of 128) exercises the padding path.
    B2, N2, C2, H2, W2 = 2, 8, 3, 10, 10
    x2 = jax.random.normal(jax.random.PRNGKey(1), (B2, N2, C2, H2, W2),
                           dtype=jnp.float32)
    gamma2 = jnp.float32(0.25)
    out2 = jax.block_until_ready(lam_module_forward(x2, gamma2))
    ref2 = _reference_forward(x2, gamma2)
    assert out2.shape == (B2, N2 * C2, H2, W2), out2.shape
    assert jnp.allclose(out2, ref2, atol=1e-4, rtol=1e-4), (
        f"padded-D mismatch: max abs err {jnp.max(jnp.abs(out2 - ref2))}"
    )

    # Case 3: bf16 smoke run (halves HBM traffic; this kernel is BW-bound).
    x_bf16 = x.astype(jnp.bfloat16)
    out_bf16 = jax.block_until_ready(lam_module_forward(x_bf16, jnp.float32(0.5)))
    assert out_bf16.shape == (B, N * C, H, W), out_bf16.shape
    assert bool(jnp.all(jnp.isfinite(out_bf16.astype(jnp.float32))))

    print("KERNEL_OK")
</pallas_src>

<mosaic_0001>
module attributes {stable_mosaic.version = 11 : i64} {
  func.func @_lam_kernel(%arg0: i32, %arg1: memref<1xf32, #tpu.memory_space<smem>>, %arg2: memref<1x8x1024xf32, #tpu.memory_space<vmem>>, %arg3: memref<1x8x1024xf32, #tpu.memory_space<vmem>>) attributes {dimension_semantics = [#tpu.dimension_semantics<parallel>], iteration_bounds = array<i64: 2>, scalar_prefetch = 0 : i64, scratch_operands = 0 : i64, tpu.core_type = #tpu.core_type<tc>, window_params = [{transform_indices = @transform_0, window_bounds = array<i64: 1>}, {transform_indices = @transform_1, window_bounds = array<i64: 1, 8, 1024>}, {transform_indices = @transform_2, window_bounds = array<i64: 1, 8, 1024>}]} {
    %c0 = arith.constant 0 : index
    %c0_0 = arith.constant 0 : index
    %c0_1 = arith.constant 0 : index
    %0 = vector.load %arg2[%c0, %c0_0, %c0_1] : memref<1x8x1024xf32, #tpu.memory_space<vmem>>, vector<1x8x1024xf32>
    %1 = vector.shape_cast %0 : vector<1x8x1024xf32> to vector<8x1024xf32>
    %cst = arith.constant dense<0.000000e+00> : vector<8x8xf32>
    %2 = tpu.matmul %1, %1, %cst {dimension_numbers = #tpu.dot_dimension_numbers<[1], [1], [0], [0], [0, 0, 1, 0], [], []>} : vector<8x1024xf32>, vector<8x1024xf32>, vector<8x8xf32> -> vector<8x8xf32>
    %cst_2 = arith.constant dense<0x7F800000> : vector<8xf32>
    %3 = vector.multi_reduction <minimumf>, %2, %cst_2 [1] : vector<8x8xf32> to vector<8xf32>
    %4 = vector.shape_cast %3 : vector<8xf32> to vector<8x1xf32>
    %5 = vector.broadcast %4 : vector<8x1xf32> to vector<8x8xf32>
    %6 = arith.subf %5, %2 : vector<8x8xf32>
    %7 = math.exp %6 : vector<8x8xf32>
    %cst_3 = arith.constant dense<0.000000e+00> : vector<8xf32>
    %8 = vector.multi_reduction <add>, %7, %cst_3 [1] : vector<8x8xf32> to vector<8xf32>
    %9 = vector.shape_cast %8 : vector<8xf32> to vector<8x1xf32>
    %10 = tpu.reciprocal %9 : vector<8x1xf32> -> vector<8x1xf32>
    %11 = vector.broadcast %10 : vector<8x1xf32> to vector<8x8xf32>
    %12 = arith.mulf %7, %11 : vector<8x8xf32>
    %cst_4 = arith.constant dense<0.000000e+00> : vector<8x1024xf32>
    %13 = tpu.matmul %12, %1, %cst_4 {dimension_numbers = #tpu.dot_dimension_numbers<[1], [0], [0], [1], [0, 0, 1, 1], [], []>} : vector<8x8xf32>, vector<8x1024xf32>, vector<8x1024xf32> -> vector<8x1024xf32>
    %c0_5 = arith.constant 0 : index
    %14 = memref.load %arg1[%c0_5] : memref<1xf32, #tpu.memory_space<smem>>
    %15 = vector.broadcast %14 : f32 to vector<8x1024xf32>
    %16 = arith.mulf %15, %13 : vector<8x1024xf32>
    %17 = arith.addf %16, %1 : vector<8x1024xf32>
    %c0_6 = arith.constant 0 : index
    %c0_7 = arith.constant 0 : index
    %c0_8 = arith.constant 0 : index
    %18 = vector.load %arg3[%c0_6, %c0_7, %c0_8] : memref<1x8x1024xf32, #tpu.memory_space<vmem>>, vector<1x8x1024xf32>
    %19 = vector.shape_cast %18 : vector<1x8x1024xf32> to vector<8x1024xf32>
    %20 = vector.shape_cast %17 : vector<8x1024xf32> to vector<1x8x1024xf32>
    tpu.vector_store %arg3[%c0_6, %c0_7, %c0_8], %20 {strides = array<i32>} : memref<1x8x1024xf32, #tpu.memory_space<vmem>>, vector<1x8x1024xf32>,
    return
  }
  func.func @transform_0(%arg0: i32) -> i32 {
    %c0_i32 = arith.constant 0 : i32
    %c0_i32_0 = arith.constant 0 : i32
    return %c0_i32 : i32
  }
  func.func @transform_1(%arg0: i32) -> (i32, i32, i32) {
    %c0_i32 = arith.constant 0 : i32
    %c0_i32_0 = arith.constant 0 : i32
    %c0_i32_1 = arith.constant 0 : i32
    return %arg0, %c0_i32, %c0_i32_0 : i32, i32, i32
  }
  func.func @transform_2(%arg0: i32) -> (i32, i32, i32) {
    %c0_i32 = arith.constant 0 : i32
    %c0_i32_0 = arith.constant 0 : i32
    %c0_i32_1 = arith.constant 0 : i32
    return %arg0, %c0_i32, %c0_i32_0 : i32, i32, i32
  }
}

</mosaic_0001>

<bundles_post_ra>
// kernel: tpu_custom_call.1
= control target key start
LH: loop header
LB: loop body
LE: loop exit
PB: predicated region body
PF: predicated region fallthrough
CT: control target
= control target key end

     0   :  { %s1268_s0 = inlined_call_operand.<no memory space> [shape: f32[1], index: 0, kind: input, shape index: {}]   ;;  %s1269_s1 = inlined_call_operand.hbm [shape: f32[2,8,1024], index: 1, kind: input, shape index: {}]   ;;  %s1270_s2 = inlined_call_operand.hbm [shape: f32[2,8,1024], index: 2, kind: output, shape index: {}]  }
   0x1   :  { %7 = sst [smem:[#allocation2]] %s1268_s0 }
   0x2   :  { %8 = vsyncpa [#allocation4], 0 }
   0x3   :  { %10 = vsyncpa [#allocation4 + $0x1], 0 }
   0x4   :  { %11 = vsyncpa [#allocation5], 0 }
   0x5   :  { %13 = vsyncpa [#allocation5 + $0x1], 0  ;;  %s1055_s11 = smov 0   ;;  %s1057_s12 = smov 0  }
   0x6   :  { %s1059_s13 = smov 0   ;;  %s1061_s14 = smov 0  }
   0x7 LB: > { %s1076_s0 = sadd.s32 4294967295, %s1032_s14   ;;  %s859_s15 = sadd.s32 4294967294, %s1032_s14   ;;  %s1032_s14 = sphi %s1061_s14, %s1285_s14   ;;  %s1028_s13 = sphi %s1059_s13, %s1284_s13   ;;  %s1024_s12 = sphi %s1057_s12, %s1283_s12   ;;  %s1020_s11 = sphi %s1055_s11, %s1282_s11  }
   0x8   : > { %s1080_s16 = sadd.s32 1, %s1032_s14   ;;  %s47_s17 = sadd.s32 1, %s1028_s13 }
   0x9   : > { %s44_s18 = ssub.s32 %s1032_s14, %s1080_s16  ;;  %p54_p0 = scmp.ne.s32.totalorder %s1028_s13, %s1024_s12 }
   0xa   : > { %p45_p1 = scmp.eq.s32.totalorder %s44_s18, 0  ;;  %p55_p2 = scmp.eq.s32.totalorder %s1032_s14, 0 }
   0xb   : > { %p60_p3 = scmp.ne.s32.totalorder %s1024_s12, %s1020_s11  ;;  %p61_p4 = scmp.eq.s32.totalorder %s1076_s0, 0 }
   0xc   : > { %s1092_s19 = scalar_select %p45_p1, %s1028_s13, %s47_s17  }
   0xd   : > { %p1094_p5 = por %p55_p2, %p54_p0  ;;  %p1098_p6 = por %p61_p4, %p60_p3 }
   0xe   : > { %p84_p7 = scmp.eq.s32.totalorder %s1076_s0, 1  ;;  %p90_p8 = scmp.eq.s32.totalorder %s859_s15, 1 }
   0xf   : > { %p897_p10 = scmp.lt.s32.totalorder %s1032_s14, 2  ;;  %s113_s24 = sand.u32 1, %s1028_s13  }
  0x10   : > { %p1105_p11 = por %p84_p7, %p54_p0  ;;  %p1109_p12 = por %p90_p8, %p60_p3 }
  0x11   : > { %s877_s25 = sshll.u32 %s1032_s14, 10  ;;  %s862_s26 = sshll.u32 %s113_s24, 6 }
  0x12   : > { %s1274_s22 = scalar_select %p1105_p11, 1, 0 }
  0x13   : > { %s1275_s23 = scalar_select %p1109_p12, 1, 0 }
  0x14   : > { %s1118_s29 = scalar_lea.hbm %s1269_s1, %s877_s25  ;;  %s117_s30 = scalar_lea.vmem [#allocation3], %s862_s26 }
  0x15   : > { %s125_s3 = sshll.u32 %s117_s30, 4  ;;  %p1122_p13 = pnand %p897_p10, %p1094_p5  ;;  %s1126_s3 = int_to_ptr.vmem [resolvable:$true] %s125_s3 }
  0x16   : > { %s114_s5 = scalar_lea.sflag [#allocation4], %s113_s24  ;;  %s936_s6 = scalar_lea.hbm %s1118_s29, 1024 }
  0x17   : > { %p937_p2 = scmp.ne.s32.totalorder %s1118_s29, %s936_s6  ;;  %p938_p3 = pneg %p1122_p13 }
  0x18   : > { %s941_s9 = scalar_lea.hbm %s1269_s1, 2048  ;;  %p942_p5 = scmp.lt.u32.totalorder %s1118_s29, %s1269_s1 }
  0x19   : > { %p939_p4 = pnand %p938_p3, %p937_p2  ;;  %p943_p8 = scmp.lt.u32.totalorder %s941_s9, %s936_s6 }
  0x1a   : > { %p945_p9 = scmp.lt.u32.totalorder %s936_s6, %s1118_s29 }
  0x1b   : > { %p940_p7 = pneg %p939_p4  ;;  %p944_p10 = por %p943_p8, %p942_p5 }
  0x1d   : > { %p946_p0 = por %p945_p9, %p944_p10 }
  0x1f   : > { %p947_p1 = pnand %p946_p0, %p940_p7 }
  0x21   : > { %950 = shalt.err (!%p947_p1)
}
  0x22   : > { %s951_s17 = scalar_lea.vmem %s1126_s3, 1024  ;;  %s1034_s18 = smov [#allocation3]  }
  0x23   : > { %p952_p2 = scmp.ne.s32.totalorder %s1126_s3, %s951_s17  ;;  %s956_s20 = sshll.u32 %s1034_s18, 4  ;;  %s957_s20 = int_to_ptr.vmem [resolvable:$false] %s956_s20 }
  0x24   : > { %s958_s24 = scalar_lea.vmem %s957_s20, 2048  ;;  %p959_p11 = scmp.lt.s32.totalorder %s1126_s3, %s957_s20 }
  0x25   : > { %p954_p4 = pnand %p952_p2, %p938_p3  ;;  %p960_p5 = scmp.lt.s32.totalorder %s958_s24, %s951_s17 }
  0x27   : > { %p955_p12 = pneg %p954_p4  ;;  %p961_p8 = por %p960_p5, %p959_p11 }
  0x29   : > { %p962_p9 = pnand %p961_p8, %p955_p12 }
  0x2b   : > { %965 = shalt.err (!%p962_p9)
}
  0x2c   : > { %892 = dma.hbm_to_vmem [thread:$0]  (!%p1122_p13), %s1118_s29, 1024, %s1126_s3, %s114_s5  }
  0x2d   : > { %p1277_p0 = scmp.lt.s32.totalorder %s1032_s14, 3  ;;  %p1278_p1 = scmp.ge.s32.totalorder %s1032_s14, 1 }
  0x2f   : > { %p131_p3 = pnand %p1278_p1, %p1277_p0 }
  0x30   : > { %s1160_s25 = sand.u32 (!%p131_p3), 1, %s1024_s12  }
  0x31   : > { %134 = sbr.rel (%p131_p3) target bundleno = 855 (0x357), region = 28  ;;  %s866_s26 = sshll.u32 (!%p131_p3), %s1160_s25, 6 }
  0x32   : > { %s137_s27 = scalar_lea.sflag (!%p131_p3), [#allocation4], %s1160_s25  ;;  %s140_s28 = scalar_lea.vmem (!%p131_p3), [#allocation3], %s866_s26 }
  0x38   : > { %1011 = dma.done.wait (%p1098_p6), %s137_s27, 1024  }
  0x39   : > { %1013 = vsyncadd (%p1098_p6), %s137_s27, 4294966272  ;;  %v1170_v0 = vld [vmem:[%s140_s28 + $0x8] sm:$0xff]  ;;  %v161_v1 = vld [vmem:[%s140_s28] sm:$0xff]  ;;  %vm449_vm0 = vcmask 64512   ;;  %v1035_v16 = vmov 0.0   ;;  %s748_s21 = sld [smem:[#allocation2]] }
  0x3a   : > { %v1172_v2 = vld [vmem:[%s140_s28 + $0x18] sm:$0xff]  ;;  %169 = vmatprep.subr.mxu0 %v1170_v0  ;;  %233 = vmatprep.mubr.f32.mxu0 %v1170_v0  ;;  %v1178_v3 = vld [vmem:[%s140_s28 + $0x10] sm:$0xff]  ;;  %v1180_v4 = vld [vmem:[%s140_s28 + $0x28] sm:$0xff]  ;;  %s160_s29 = scalar_lea.vmem [#allocation6], %s866_s26  ;;  %s878_s30 = sshll.u32 %s1076_s0, 10 }
  0x3b   : > { %170 = vmatpush1.xpose.msra.mxu0 %v161_v1  ;;  %464 = vmatprep.subr.mxu1 %v1170_v0  ;;  %v1186_v5 = vld [vmem:[%s140_s28 + $0x20] sm:$0xff]  ;;  %v1188_v6 = vld [vmem:[%s140_s28 + $0x38] sm:$0xff]  ;;  %v1194_v7 = vld [vmem:[%s140_s28 + $0x30] sm:$0xff]  ;;  %s789_s3 = sshll.u32 %s160_s29, 4  ;;  %s1224_s6 = scalar_lea.hbm %s1270_s2, %s878_s30  ;;  %s1226_s3 = int_to_ptr.vmem [resolvable:$true] %s789_s3 }
  0x3c   : > { %239 = vmatprep.subr.mxu0 %v1172_v2  ;;  %465 = vmatpush1.msra.mxu1 %v161_v1  ;;  %s775_s0 = scalar_lea.sflag [#allocation5], %s1160_s25  ;;  %s966_s7 = scalar_lea.vmem %s1226_s3, 1024 }
  0x3d   : > { %535 = vmatprep.subr.mxu1 %v1172_v2  ;;  %528 = vmatprep.mubr.f32.mxu1 %v1035_v16  ;;  %p967_p6 = scmp.ne.s32.totalorder %s1226_s3, %s966_s7  ;;  %p1279_p11 = scmp.ne.s32.totalorder %s1274_s22, 0 }
  0x3e   : > { %234 = vmatmul.mubr.f32.vlgmr.msra.gmra.mrb[0].mxu0 %v161_v1  ;;  %s1036_s8 = smov [#allocation6]  }
  0x3f   : > { %240 = vmatpush1.xpose.msra.mxu0 %v1178_v3  ;;  %303 = vmatprep.mubr.f32.mxu0 %v1172_v2  ;;  %v749_v20 = vstv %s748_s21  ;;  %p968_p12 = pnand %p967_p6, %p1279_p11  ;;  %s970_s9 = sshll.u32 %s1036_s8, 4  ;;  %s971_s9 = int_to_ptr.vmem [resolvable:$false] %s970_s9 }
  0x40   : > { %309 = vmatprep.subr.mxu0 %v1180_v4  ;;  %s972_s10 = scalar_lea.vmem %s971_s9, 2048  ;;  %p973_p7 = scmp.lt.s32.totalorder %s1226_s3, %s971_s9 }
  0x41   : > { %p969_p13 = pneg %p968_p12  ;;  %p974_p10 = scmp.lt.s32.totalorder %s972_s10, %s966_s7 }
  0x43   : > { %p975_p2 = por %p974_p10, %p973_p7 }
  0x45   : > { %p976_p4 = pnand %p975_p2, %p969_p13 }
  0x46   : > { %304 = vmatmul.mubr.f32.vlgmr.msra.gmra.mrb[0].mxu0 %v1178_v3 }
  0x47   : > { %310 = vmatpush1.xpose.msra.mxu0 %v1186_v5  ;;  %373 = vmatprep.mubr.f32.mxu0 %v1180_v4 }
  0x48   : > { %379 = vmatprep.subr.mxu0 %v1188_v6 }
  0x4e   : > { %374 = vmatmul.mubr.f32.vlgmr.msra.gmra.mrb[0].mxu0 %v1186_v5 }
  0x4f   : > { %380 = vmatpush1.xpose.msra.mxu0 %v1194_v7  ;;  %443 = vmatprep.mubr.f32.mxu0 %v1188_v6 }
  0x56   : > { %444 = vmatmul.mubr.f32.vlgmr.msra.gmra.mrb[0].mxu0 %v1194_v7 }
 0x129   : > { %v445_v8 = vpop.f32.mrb[0].mxu0 }
 0x12a   : > { %v447_v9 = vpop.f32.mrb[1].mxu0  ;;  %v450_v10 = vsel %vm449_vm0, %v445_v8, inf }
 0x12b   : > { %451 = vmin.xlane.f32.xlu0 %v450_v10 }
 0x1b8   : > { %v452_v11 = vpop.xlane.xlu0 %451 }
 0x1b9   : > { %v453_v12 = vsub.f32 %v452_v11, %v445_v8 }
 0x1bb   : > { %v454_v13 = vmul.f32 1.442695, %v453_v12 }
 0x1bd   : > { %932 = vpow2.f32 %v454_v13 }
 0x1c7   : > { %v933_v14 = vpop.eup %932 }
 0x1c8   : > { %v456_v15 = vsel %vm449_vm0, %v933_v14, 0.0 }
 0x1c9   : > { %457 = vadd.xlane.f32.xlu0 %v456_v15 }
 0x256   : > { %v458_v17 = vpop.xlane.xlu0 %457 }
 0x257   : > { %934 = vrcp.f32 %v458_v17 }
 0x261   : > { %v935_v18 = vpop.eup %934 }
 0x262   : > { %v460_v19 = vmul.f32 %v935_v18, %v933_v14 }
 0x264   : > { %868 = vmatmul.mubr.msk.f32.vlgmr.msra.gmra.mrb[0].mxu1 %vm449_vm0, %v460_v19 }
 0x265   : > { %536 = vmatpush1.msra.mxu1 %v1178_v3  ;;  %599 = vmatprep.mubr.f32.mxu1 %v1035_v16 }
 0x266   : > { %606 = vmatprep.subr.mxu1 %v1180_v4 }
 0x268   : > { %869 = vmatmul.mubr.msk.f32.vlgmr.msra.gmra.mrb[2].mxu1 %vm449_vm0, %v460_v19 }
 0x269   : > { %607 = vmatpush1.msra.mxu1 %v1186_v5  ;;  %670 = vmatprep.mubr.f32.mxu1 %v1035_v16 }
 0x26a   : > { %677 = vmatprep.subr.mxu1 %v1188_v6 }
 0x26c   : > { %870 = vmatmul.mubr.msk.f32.vlgmr.msra.gmra.mrb[4].mxu1 %vm449_vm0, %v460_v19 }
 0x26d   : > { %678 = vmatpush1.msra.mxu1 %v1194_v7  ;;  %741 = vmatprep.mubr.f32.mxu1 %v1035_v16 }
 0x270   : > { %871 = vmatmul.mubr.msk.f32.vlgmr.msra.gmra.mrb[6].mxu1 %vm449_vm0, %v460_v19 }
 0x337   : > { %v530_v21 = vpop.f32.mrb[0].mxu1 }
 0x338   : > { %v750_v22 = vmul.f32 %v749_v20, %v530_v21  ;;  %v532_v23 = vpop.f32.mrb[1].mxu1 }
 0x339   : > { %v751_v24 = vmul.f32 %v749_v20, %v532_v23 }
 0x33a   : > { %v758_v25 = vadd.f32 %v750_v22, %v161_v1 }
 0x33b   : > { %v759_v26 = vadd.f32 %v751_v24, %v1170_v0  ;;  %v601_v27 = vpop.f32.mrb[2].mxu1 }
 0x33c   : > { %766 = vst [vmem:[%s160_s29] sm:$0xff] %v758_v25  ;;  %v752_v28 = vmul.f32 %v749_v20, %v601_v27  ;;  %v603_v29 = vpop.f32.mrb[3].mxu1 }
 0x33d   : > { %767 = vst [vmem:[%s160_s29 + $0x8] sm:$0xff] %v759_v26  ;;  %v753_v30 = vmul.f32 %v749_v20, %v603_v29 }
 0x33e   : > { %v760_v31 = vadd.f32 %v752_v28, %v1178_v3 }
 0x33f   : > { %v761_v32 = vadd.f32 %v753_v30, %v1172_v2  ;;  %v672_v33 = vpop.f32.mrb[4].mxu1 }
 0x340   : > { %768 = vst [vmem:[%s160_s29 + $0x10] sm:$0xff] %v760_v31  ;;  %v754_v34 = vmul.f32 %v749_v20, %v672_v33  ;;  %v674_v35 = vpop.f32.mrb[5].mxu1 }
 0x341   : > { %769 = vst [vmem:[%s160_s29 + $0x18] sm:$0xff] %v761_v32  ;;  %v755_v36 = vmul.f32 %v749_v20, %v674_v35 }
 0x342   : > { %v762_v37 = vadd.f32 %v754_v34, %v1186_v5 }
 0x343   : > { %v763_v38 = vadd.f32 %v755_v36, %v1180_v4  ;;  %v743_v39 = vpop.f32.mrb[6].mxu1 }
 0x344   : > { %770 = vst [vmem:[%s160_s29 + $0x20] sm:$0xff] %v762_v37  ;;  %v756_v40 = vmul.f32 %v749_v20, %v743_v39  ;;  %v745_v41 = vpop.f32.mrb[7].mxu1 }
 0x345   : > { %771 = vst [vmem:[%s160_s29 + $0x28] sm:$0xff] %v763_v38  ;;  %v757_v42 = vmul.f32 %v749_v20, %v745_v41 }
 0x346   : > { %v764_v43 = vadd.f32 %v756_v40, %v1194_v7 }
 0x347   : > { %v765_v44 = vadd.f32 %v757_v42, %v1188_v6 }
 0x348   : > { %772 = vst [vmem:[%s160_s29 + $0x30] sm:$0xff] %v764_v43 }
 0x349   : > { %773 = vst [vmem:[%s160_s29 + $0x38] sm:$0xff] %v765_v44 }
 0x34a   : > { %979 = shalt.err (!%p976_p4)
}
 0x34b   : > { %s980_s15 = scalar_lea.hbm %s1224_s6, 1024  ;;  %s984_s20 = scalar_lea.hbm %s1270_s2, 2048 }
 0x34c   : > { %p981_p5 = scmp.ne.s32.totalorder %s1224_s6, %s980_s15  ;;  %p985_p0 = scmp.lt.u32.totalorder %s1224_s6, %s1270_s2 }
 0x34d   : > { %p986_p1 = scmp.lt.u32.totalorder %s984_s20, %s980_s15  ;;  %p988_p6 = scmp.lt.u32.totalorder %s980_s15, %s1224_s6 }
 0x34e   : > { %p982_p8 = pnand %p981_p5, %p1279_p11 }
 0x34f   : > { %p987_p3 = por %p986_p1, %p985_p0 }
 0x350   : > { %p983_p9 = pneg %p982_p8 }
 0x351   : > { %p989_p12 = por %p988_p6, %p987_p3 }
 0x353   : > { %p990_p13 = pnand %p989_p12, %p983_p9 }
 0x355   : > { %993 = shalt.err (!%p990_p13)
}
 0x356   : > { %887 = dma.vmem_to_hbm [thread:$0]  (%p1279_p11), %s1226_s3, 1024, %s1224_s6, %s775_s0  }
 0x357 PF: > { %s801_s26 = sand.u32 1, %s1020_s11   ;;  %p1280_p7 = scmp.ne.s32.totalorder %s1275_s23, 0 }
 0x358   : > { %p1281_p10 = scmp.ge.s32.totalorder %s1032_s14, 2  ;;  %s802_s27 = scalar_lea.sflag [#allocation5], %s801_s26 }
 0x35a   : > { %p894_p2 = pnand %p1281_p10, %p1280_p7 }
 0x35c   : > { %1015 = dma.done.wait (!%p894_p2), %s802_s27, 1024  }
 0x35d   : > { %1017 = vsyncadd (!%p894_p2), %s802_s27, 4294966272  ;;  %p16_p4 = scmp.ge.s32.totalorder %s1080_s16, 4   ;;  %s1282_s11 = smov %s1024_s12 }
 0x35e   : > { %s1283_s12 = smov %s1028_s13  ;;  %s1284_s13 = smov %s1092_s19 }
 0x35f   : > { %s1285_s14 = smov %s1080_s16  ;;  %18 = sbr.rel (!%p16_p4) target bundleno = 7 (0x7), region = 73 }
 0x366   :  { %807 = vsyncpa [#allocation4], 1 }
 0x367   :  { %809 = vsyncpa [#allocation4 + $0x1], 1 }
 0x368   :  { %810 = vsyncpa [#allocation5], 1 }
 0x369   :  { %812 = vsyncpa [#allocation5 + $0x1], 1 }

</bundles_post_ra>
